<compile_context>
chip_gen: v7x
topology: tpu7x:2x2x1
jax: 0.10.0
libtpu: 0.0.40
codegen_flags: <defaults>
</compile_context>

<pallas_src>
import functools

import numpy as np

import jax
import jax.numpy as jnp
from jax import lax
from jax.experimental import pallas as pl
from jax.experimental.pallas import tpu as pltpu


# ----------------------------------------------------------------------------
# Host-side (numpy) mesh / interpolation constants
# ----------------------------------------------------------------------------
_FLIP_SIGN = np.array([-1.0, 1.0, 1.0, -1.0, -1.0, 1.0], dtype=np.float32)
_EPS = 1e-12


def make_cube_faces_np(n):
    """Triangle indices for 6 independent n x n vertex grids (6*n*n vertices)."""
    idx = np.arange(n * n, dtype=np.int32).reshape(n, n)
    p00 = idx[:-1, :-1].reshape(-1)
    p10 = idx[1:, :-1].reshape(-1)
    p01 = idx[:-1, 1:].reshape(-1)
    p11 = idx[1:, 1:].reshape(-1)
    tri_a = np.stack([p00, p10, p01], axis=1)
    tri_b = np.stack([p11, p01, p10], axis=1)
    per_face = np.concatenate([tri_a, tri_b], axis=0)            # (2*(n-1)^2, 3)
    offs = (np.arange(6, dtype=np.int32) * (n * n))[:, None, None]
    return (per_face[None] + offs).reshape(-1, 3).astype(np.int32)


def interp_matrix_np(n_out, n_in):
    """1-D bilinear interpolation matrix, align_corners=True (F.interpolate)."""
    if n_in == 1:
        return np.ones((n_out, 1), np.float32)
    pos = np.arange(n_out, dtype=np.float64) * (n_in - 1) / max(n_out - 1, 1)
    k0 = np.clip(np.floor(pos), 0, n_in - 2).astype(np.int64)
    frac = pos - k0
    a = np.zeros((n_out, n_in), np.float64)
    a[np.arange(n_out), k0] += 1.0 - frac
    a[np.arange(n_out), k0 + 1] += frac
    return a.astype(np.float32)


def block_diag6_np(b):
    """Block-diagonal matrix with 6 copies of b on the diagonal."""
    r, c = b.shape
    out = np.zeros((6 * r, 6 * c), np.float32)
    for k in range(6):
        out[k * r:(k + 1) * r, k * c:(k + 1) * c] = b
    return out


# ----------------------------------------------------------------------------
# Layout helpers (plain-JAX glue: shape plumbing only; fuses into one XLA op)
# ----------------------------------------------------------------------------
def to_stacked(v, n):
    # (6*n*n, 3) -> (6, 3, n, n)
    return jnp.transpose(v.reshape(6, n, n, 3), (0, 3, 1, 2))


def to_vertices(s):
    # (6, 3, h, w) -> (6*h*w, 3)
    f, c, h, w = s.shape
    return jnp.transpose(s, (0, 2, 3, 1)).reshape(f * h * w, c)


# ----------------------------------------------------------------------------
# In-kernel shift helpers (value-space, zero edge fill; only slices + lane /
# sublane concatenation — both proven to lower on this toolchain)
# ----------------------------------------------------------------------------
def _shift_rows(x, direction):
    """direction=-1: y[i,:] = x[i+1,:] (zero last row);  +1: y[i,:] = x[i-1,:]."""
    z = jnp.zeros((1, x.shape[1]), x.dtype)
    if direction < 0:
        return jnp.concatenate([x[1:, :], z], axis=0)
    return jnp.concatenate([z, x[:-1, :]], axis=0)


def _shift_cols(x, direction):
    """direction=-1: y[:,j] = x[:,j+1] (zero last col);  +1: y[:,j] = x[:,j-1]."""
    z = jnp.zeros((x.shape[0], 1), x.dtype)
    if direction < 0:
        return jnp.concatenate([x[:, 1:], z], axis=1)
    return jnp.concatenate([z, x[:, :-1]], axis=1)


# ----------------------------------------------------------------------------
# Fused Pallas kernel
# ----------------------------------------------------------------------------
def octave_fused_kernel(x_ref, w1_ref, w2_ref, ps_ref, mask_ref, sign_ref,
                        vert_ref, nrm_ref, *, n, factor):
    """Fused upsample + displacement + vertex normals for all 6 cube faces.

    x_ref:    (6m, 6m)   packed input grids: row = ch*m + p, col = face*m + q
                         (channels 0-2 = vrt xyz, 3-5 = nrm xyz)
    w1_ref:   (6m, 6n)   block_diag(A^T) per face   (separable upsample, stage 1)
    w2_ref:   (6n, 6m)   block_diag(A)   per channel (separable upsample, stage 2)
    ps_ref:   (n,  6n)   displacement logits, col = face*n + j
    mask_ref: (n,  6n)   1.0 at valid cells (i < n-1 and j < n-1 within a face)
    sign_ref: (1,  6n)   per-face sign flips (faces 0, 3, 4 mirrored)
    vert_ref: (3, n, 6n) displaced vertices (out)
    nrm_ref:  (3, n, 6n) unit vertex normals (out)
    """
    # --- Separable bilinear upsample: two lane-dense 2D MXU matmuls. ---------
    y = jnp.dot(x_ref[...], w1_ref[...], preferred_element_type=jnp.float32)   # (6m, 6n)
    u = jnp.dot(w2_ref[...], y, preferred_element_type=jnp.float32)            # (6n, 6n)

    # --- Displacement epilogue (channel slabs are (n, 6n); n % 8 == 0 keeps
    #     every slice sublane-tile aligned). ----------------------------------
    gx = u[3 * n:4 * n]
    gy = u[4 * n:5 * n]
    gz = u[5 * n:6 * n]
    mag = jnp.sqrt(gx * gx + gy * gy + gz * gz)               # ||upsampled nrm||
    sig = 1.0 / (1.0 + jnp.exp(-ps_ref[...]))                 # exact sigmoid (EUP)
    disp = (factor * sig) * mag                               # same add on x, y, z
    vx = u[0:n] + disp
    vy = u[n:2 * n] + disp
    vz = u[2 * n:3 * n] + disp
    vert_ref[0] = vx
    vert_ref[1] = vy
    vert_ref[2] = vz

    # --- Per-triangle unit face normals on the cell grid (cell = its p00). ---
    # Triangle A = (p00, p10, p01), triangle B = (p11, p01, p10) per grid cell.
    ea1, ea2, eb1, eb2 = [], [], [], []
    for v in (vx, vy, vz):
        v01 = _shift_cols(v, -1)          # p01 component
        v10 = _shift_rows(v, -1)          # p10 component
        v11 = _shift_rows(v01, -1)        # p11 component
        ea1.append(v10 - v)               # p10 - p00
        ea2.append(v01 - v)               # p01 - p00
        eb1.append(v01 - v11)             # p01 - p11
        eb2.append(v10 - v11)             # p10 - p11

    def cross(a, b):
        return (a[1] * b[2] - a[2] * b[1],
                a[2] * b[0] - a[0] * b[2],
                a[0] * b[1] - a[1] * b[0])

    na = cross(ea1, ea2)
    nb = cross(eb1, eb2)
    msk = mask_ref[...]                   # kills non-existent / cross-face cells
    inv_a = lax.rsqrt(na[0] * na[0] + na[1] * na[1] + na[2] * na[2] + _EPS) * msk
    inv_b = lax.rsqrt(nb[0] * nb[0] + nb[1] * nb[1] + nb[2] * nb[2] + _EPS) * msk
    na = [c * inv_a for c in na]
    nb = [c * inv_b for c in nb]

    # --- Scatter-free vertex-normal accumulation, in values (single store per
    #     channel):  acc[i,l] = na[i,l] + nab[i,l-1] + nab[i-1,l] + nb[i-1,l-1]
    acc = []
    for c in range(3):
        nab = na[c] + nb[c]
        acc.append(na[c]
                   + _shift_cols(nab, +1)
                   + _shift_rows(nab + _shift_cols(nb[c], +1), +1))

    scale = lax.rsqrt(acc[0] * acc[0] + acc[1] * acc[1] + acc[2] * acc[2] + _EPS)
    scale = scale * sign_ref[...]         # per-face sign flips fused in
    nrm_ref[0] = acc[0] * scale
    nrm_ref[1] = acc[1] * scale
    nrm_ref[2] = acc[2] * scale


# ----------------------------------------------------------------------------
# Forward pass builder
# ----------------------------------------------------------------------------
def build_octave_forward(n, m, factor_exp=1):
    """Returns a jitted forward(vrt, nrm, ps) -> (vert, faces, normals)."""
    assert n % 8 == 0, "n must be a multiple of 8 for aligned channel slabs"
    factor = 2.0 ** (-factor_exp)

    faces = jnp.asarray(make_cube_faces_np(n))
    a = interp_matrix_np(n, m)                                 # (n, m)
    w1 = jnp.asarray(block_diag6_np(np.ascontiguousarray(a.T)))  # (6m, 6n)
    w2 = jnp.asarray(block_diag6_np(a))                          # (6n, 6m)

    cell = np.zeros((n, n), np.float32)
    cell[:n - 1, :n - 1] = 1.0
    mask = jnp.asarray(np.tile(cell, (1, 6)))                  # (n, 6n)
    sign_row = jnp.asarray(np.repeat(_FLIP_SIGN, n)[None, :])  # (1, 6n)

    def _vmem_spec():
        return pl.BlockSpec(memory_space=pltpu.MemorySpace.VMEM)

    kernel_call = pl.pallas_call(
        functools.partial(octave_fused_kernel, n=n, factor=factor),
        out_shape=(jax.ShapeDtypeStruct((3, n, 6 * n), jnp.float32),
                   jax.ShapeDtypeStruct((3, n, 6 * n), jnp.float32)),
        in_specs=[_vmem_spec() for _ in range(6)],
        out_specs=(_vmem_spec(), _vmem_spec()),
    )
    # TODO(synk): for large n, add a grid over the 6n output columns (marked
    # "parallel" for v7x's two TensorCores), switch the shift helpers to
    # pltpu.roll, consider bf16 matmul inputs, and re-derive tile sizes from the
    # 64 MiB (v7x) VMEM budget with CompilerParams(vmem_limit_bytes=...).

    @jax.jit
    def forward(vrt, nrm, ps):
        # Pack once: X[ch*m + p, f*m + q] with ch = [vrt xyz, nrm xyz].
        vrt_g = to_stacked(vrt, m)                             # (6, 3, m, m)
        nrm_g = to_stacked(nrm, m)
        grids = jnp.concatenate([vrt_g, nrm_g], axis=1)        # (6f, 6ch, m, m)
        x = jnp.transpose(grids, (1, 2, 0, 3)).reshape(6 * m, 6 * m)
        ps_r = jnp.transpose(ps.astype(jnp.float32).reshape(6, n, n),
                             (1, 0, 2)).reshape(n, 6 * n)      # (n, 6n)

        vert_k, nrm_k = kernel_call(x, w1, w2, ps_r, mask, sign_row)

        # Emit the (V, 3) channel-minor layout exactly once, at the very end.
        vert = jnp.transpose(vert_k.reshape(3, n, 6, n), (2, 1, 3, 0)).reshape(-1, 3)
        normals = jnp.transpose(nrm_k.reshape(3, n, 6, n), (2, 1, 3, 0)).reshape(-1, 3)
        return vert, faces, normals

    return forward


# ----------------------------------------------------------------------------
# Plain-JAX reference (self-check only)
# ----------------------------------------------------------------------------
def reference_upsample_displace(vrt, nrm, ps, n, m, factor):
    a = jnp.asarray(interp_matrix_np(n, m))
    vrt_g = to_stacked(vrt, m)
    nrm_g = to_stacked(nrm, m)
    up_v = jnp.einsum('ip,fcpq,jq->fcij', a, vrt_g, a)
    up_n = jnp.einsum('ip,fcpq,jq->fcij', a, nrm_g, a)
    mag = jnp.sqrt(jnp.sum(up_n * up_n, axis=1, keepdims=True))
    stacked = up_v + factor * jax.nn.sigmoid(ps) * mag
    return to_vertices(stacked)


def reference_vertex_normals(vert, faces, n):
    v0 = vert[faces[:, 0]]
    v1 = vert[faces[:, 1]]
    v2 = vert[faces[:, 2]]
    fn = jnp.cross(v1 - v0, v2 - v0)
    fn = fn * lax.rsqrt(jnp.sum(fn * fn, axis=-1, keepdims=True) + _EPS)
    acc = jnp.zeros_like(vert)
    for k in range(3):
        acc = acc.at[faces[:, k]].add(fn)
    out = acc * lax.rsqrt(jnp.sum(acc * acc, axis=-1, keepdims=True) + _EPS)
    s = to_stacked(out, n) * jnp.asarray(_FLIP_SIGN).reshape(6, 1, 1, 1)
    return to_vertices(s)


# ----------------------------------------------------------------------------
# Example input construction + run
# ----------------------------------------------------------------------------
def make_cube_inputs(m, key):
    t = jnp.linspace(-1.0, 1.0, m, dtype=jnp.float32)
    u, v = jnp.meshgrid(t, t, indexing="ij")
    one = jnp.ones_like(u)
    face_pts = [
        jnp.stack([one, u, v], -1),    # +x
        jnp.stack([-one, u, v], -1),   # -x
        jnp.stack([u, one, v], -1),    # +y
        jnp.stack([u, -one, v], -1),   # -y
        jnp.stack([u, v, one], -1),    # +z
        jnp.stack([u, v, -one], -1),   # -z
    ]
    nrm_dirs = jnp.array(
        [[1, 0, 0], [-1, 0, 0], [0, 1, 0], [0, -1, 0], [0, 0, 1], [0, 0, -1]],
        dtype=jnp.float32,
    )
    vrt = jnp.stack(face_pts, 0).reshape(6 * m * m, 3).astype(jnp.float32)
    nrm = jnp.repeat(nrm_dirs, m * m, axis=0)
    vrt = vrt + 0.01 * jax.random.normal(key, vrt.shape, dtype=jnp.float32)
    return vrt, nrm


if __name__ == "__main__":
    n = 16          # octave resolution (output grid per cube face)
    m = 8           # input resolution of incoming vrt / nrm grids
    factor_exp = 1  # factor = 2 ** (-1)
    noise = 0.025

    key = jax.random.PRNGKey(0)
    vrt, nrm = make_cube_inputs(m, key)

    # Parameter init exactly as in __init__: torch.zeros(6, 1, n, n) * noise == zeros.
    ps = jnp.zeros((6, 1, n, n), dtype=jnp.float32) * noise

    forward = build_octave_forward(n, m, factor_exp)
    vert, faces_out, normals = forward(vrt, nrm, ps)
    jax.block_until_ready((vert, faces_out, normals))

    assert vert.shape == (6 * n * n, 3)
    assert normals.shape == (6 * n * n, 3)
    assert faces_out.shape == (6 * 2 * (n - 1) * (n - 1), 3)

    # Self-checks against a plain-JAX/XLA reference (loose tolerance on vert:
    # MXU f32 pass structure may differ between the Pallas matmuls and XLA einsum).
    factor = 2.0 ** (-factor_exp)
    vert_ref = reference_upsample_displace(vrt, nrm, ps, n, m, factor)
    normals_ref = reference_vertex_normals(vert, faces_out, n)
    assert bool(jnp.allclose(vert, vert_ref, atol=1e-2)), "vertex mismatch"
    assert bool(jnp.allclose(normals, normals_ref, atol=1e-3)), "normal mismatch"
    assert bool(jnp.allclose(jnp.linalg.norm(normals, axis=-1), 1.0, atol=1e-3))

    print("KERNEL_OK")
</pallas_src>

<mosaic_0001>
module attributes {stable_mosaic.version = 11 : i64} {
  func.func @octave_fused_kernel(%arg0: memref<48x48xf32, #tpu.memory_space<vmem>>, %arg1: memref<48x96xf32, #tpu.memory_space<vmem>>, %arg2: memref<96x48xf32, #tpu.memory_space<vmem>>, %arg3: memref<16x96xf32, #tpu.memory_space<vmem>>, %arg4: memref<16x96xf32, #tpu.memory_space<vmem>>, %arg5: memref<1x96xf32, #tpu.memory_space<vmem>>, %arg6: memref<3x16x96xf32, #tpu.memory_space<vmem>>, %arg7: memref<3x16x96xf32, #tpu.memory_space<vmem>>) attributes {dimension_semantics = [], scalar_prefetch = 0 : i64, scratch_operands = 0 : i64, tpu.core_type = #tpu.core_type<tc>} {
    %c0 = arith.constant 0 : index
    %c0_0 = arith.constant 0 : index
    %0 = vector.load %arg0[%c0, %c0_0] : memref<48x48xf32, #tpu.memory_space<vmem>>, vector<48x48xf32>
    %c0_1 = arith.constant 0 : index
    %c0_2 = arith.constant 0 : index
    %1 = vector.load %arg1[%c0_1, %c0_2] : memref<48x96xf32, #tpu.memory_space<vmem>>, vector<48x96xf32>
    %cst = arith.constant dense<0.000000e+00> : vector<48x96xf32>
    %2 = tpu.matmul %0, %1, %cst {dimension_numbers = #tpu.dot_dimension_numbers<[1], [0], [0], [1], [0, 0, 1, 1], [], []>} : vector<48x48xf32>, vector<48x96xf32>, vector<48x96xf32> -> vector<48x96xf32>
    %c0_3 = arith.constant 0 : index
    %c0_4 = arith.constant 0 : index
    %3 = vector.load %arg2[%c0_3, %c0_4] : memref<96x48xf32, #tpu.memory_space<vmem>>, vector<96x48xf32>
    %cst_5 = arith.constant dense<0.000000e+00> : vector<96x96xf32>
    %4 = tpu.matmul %3, %2, %cst_5 {dimension_numbers = #tpu.dot_dimension_numbers<[1], [0], [0], [1], [0, 0, 1, 1], [], []>} : vector<96x48xf32>, vector<48x96xf32>, vector<96x96xf32> -> vector<96x96xf32>
    %5 = vector.extract_strided_slice %4 {offsets = [48, 0], sizes = [16, 96], strides = [1, 1]} : vector<96x96xf32> to vector<16x96xf32>
    %6 = vector.extract_strided_slice %4 {offsets = [64, 0], sizes = [16, 96], strides = [1, 1]} : vector<96x96xf32> to vector<16x96xf32>
    %7 = vector.extract_strided_slice %4 {offsets = [80, 0], sizes = [16, 96], strides = [1, 1]} : vector<96x96xf32> to vector<16x96xf32>
    %8 = arith.mulf %5, %5 : vector<16x96xf32>
    %9 = arith.mulf %6, %6 : vector<16x96xf32>
    %10 = arith.addf %8, %9 : vector<16x96xf32>
    %11 = arith.mulf %7, %7 : vector<16x96xf32>
    %12 = arith.addf %10, %11 : vector<16x96xf32>
    %13 = math.sqrt %12 : vector<16x96xf32>
    %c0_6 = arith.constant 0 : index
    %c0_7 = arith.constant 0 : index
    %14 = vector.load %arg3[%c0_6, %c0_7] : memref<16x96xf32, #tpu.memory_space<vmem>>, vector<16x96xf32>
    %cst_8 = arith.constant 0.000000e+00 : f32
    %15 = vector.broadcast %cst_8 : f32 to vector<16x96xf32>
    %16 = arith.subf %15, %14 : vector<16x96xf32>
    %17 = math.exp %16 : vector<16x96xf32>
    %cst_9 = arith.constant 1.000000e+00 : f32
    %18 = vector.broadcast %cst_9 : f32 to vector<16x96xf32>
    %19 = arith.addf %18, %17 : vector<16x96xf32>
    %cst_10 = arith.constant 1.000000e+00 : f32
    %20 = vector.broadcast %cst_10 : f32 to vector<16x96xf32>
    %21 = arith.divf %20, %19 : vector<16x96xf32>
    %cst_11 = arith.constant 5.000000e-01 : f32
    %22 = vector.broadcast %cst_11 : f32 to vector<16x96xf32>
    %23 = arith.mulf %22, %21 : vector<16x96xf32>
    %24 = arith.mulf %23, %13 : vector<16x96xf32>
    %25 = vector.extract_strided_slice %4 {offsets = [0, 0], sizes = [16, 96], strides = [1, 1]} : vector<96x96xf32> to vector<16x96xf32>
    %26 = arith.addf %25, %24 : vector<16x96xf32>
    %27 = vector.extract_strided_slice %4 {offsets = [16, 0], sizes = [16, 96], strides = [1, 1]} : vector<96x96xf32> to vector<16x96xf32>
    %28 = arith.addf %27, %24 : vector<16x96xf32>
    %29 = vector.extract_strided_slice %4 {offsets = [32, 0], sizes = [16, 96], strides = [1, 1]} : vector<96x96xf32> to vector<16x96xf32>
    %30 = arith.addf %29, %24 : vector<16x96xf32>
    %c0_12 = arith.constant 0 : index
    %c0_13 = arith.constant 0 : index
    %c0_14 = arith.constant 0 : index
    %31 = vector.load %arg6[%c0_12, %c0_13, %c0_14] : memref<3x16x96xf32, #tpu.memory_space<vmem>>, vector<1x16x96xf32>
    %32 = vector.shape_cast %31 : vector<1x16x96xf32> to vector<16x96xf32>
    %33 = vector.shape_cast %26 : vector<16x96xf32> to vector<1x16x96xf32>
    tpu.vector_store %arg6[%c0_12, %c0_13, %c0_14], %33 {strides = array<i32>} : memref<3x16x96xf32, #tpu.memory_space<vmem>>, vector<1x16x96xf32>,
    %c1 = arith.constant 1 : index
    %c0_15 = arith.constant 0 : index
    %c0_16 = arith.constant 0 : index
    %34 = vector.load %arg6[%c1, %c0_15, %c0_16] : memref<3x16x96xf32, #tpu.memory_space<vmem>>, vector<1x16x96xf32>
    %35 = vector.shape_cast %34 : vector<1x16x96xf32> to vector<16x96xf32>
    %36 = vector.shape_cast %28 : vector<16x96xf32> to vector<1x16x96xf32>
    tpu.vector_store %arg6[%c1, %c0_15, %c0_16], %36 {strides = array<i32>} : memref<3x16x96xf32, #tpu.memory_space<vmem>>, vector<1x16x96xf32>,
    %c2 = arith.constant 2 : index
    %c0_17 = arith.constant 0 : index
    %c0_18 = arith.constant 0 : index
    %37 = vector.load %arg6[%c2, %c0_17, %c0_18] : memref<3x16x96xf32, #tpu.memory_space<vmem>>, vector<1x16x96xf32>
    %38 = vector.shape_cast %37 : vector<1x16x96xf32> to vector<16x96xf32>
    %39 = vector.shape_cast %30 : vector<16x96xf32> to vector<1x16x96xf32>
    tpu.vector_store %arg6[%c2, %c0_17, %c0_18], %39 {strides = array<i32>} : memref<3x16x96xf32, #tpu.memory_space<vmem>>, vector<1x16x96xf32>,
    %cst_19 = arith.constant 0.000000e+00 : f32
    %40 = vector.broadcast %cst_19 : f32 to vector<16x1xf32>
    %41 = vector.extract_strided_slice %26 {offsets = [0, 1], sizes = [16, 95], strides = [1, 1]} : vector<16x96xf32> to vector<16x95xf32>
    %42 = tpu.concatenate %41, %40 in 1 : vector<16x95xf32>, vector<16x1xf32> -> vector<16x96xf32>
    %cst_20 = arith.constant 0.000000e+00 : f32
    %43 = vector.broadcast %cst_20 : f32 to vector<1x96xf32>
    %44 = vector.extract_strided_slice %26 {offsets = [1, 0], sizes = [15, 96], strides = [1, 1]} : vector<16x96xf32> to vector<15x96xf32>
    %45 = tpu.concatenate %44, %43 in 0 : vector<15x96xf32>, vector<1x96xf32> -> vector<16x96xf32>
    %cst_21 = arith.constant 0.000000e+00 : f32
    %46 = vector.broadcast %cst_21 : f32 to vector<1x96xf32>
    %47 = vector.extract_strided_slice %42 {offsets = [1, 0], sizes = [15, 96], strides = [1, 1]} : vector<16x96xf32> to vector<15x96xf32>
    %48 = tpu.concatenate %47, %46 in 0 : vector<15x96xf32>, vector<1x96xf32> -> vector<16x96xf32>
    %49 = arith.subf %45, %26 : vector<16x96xf32>
    %50 = arith.subf %42, %26 : vector<16x96xf32>
    %51 = arith.subf %42, %48 : vector<16x96xf32>
    %52 = arith.subf %45, %48 : vector<16x96xf32>
    %cst_22 = arith.constant 0.000000e+00 : f32
    %53 = vector.broadcast %cst_22 : f32 to vector<16x1xf32>
    %54 = vector.extract_strided_slice %28 {offsets = [0, 1], sizes = [16, 95], strides = [1, 1]} : vector<16x96xf32> to vector<16x95xf32>
    %55 = tpu.concatenate %54, %53 in 1 : vector<16x95xf32>, vector<16x1xf32> -> vector<16x96xf32>
    %cst_23 = arith.constant 0.000000e+00 : f32
    %56 = vector.broadcast %cst_23 : f32 to vector<1x96xf32>
    %57 = vector.extract_strided_slice %28 {offsets = [1, 0], sizes = [15, 96], strides = [1, 1]} : vector<16x96xf32> to vector<15x96xf32>
    %58 = tpu.concatenate %57, %56 in 0 : vector<15x96xf32>, vector<1x96xf32> -> vector<16x96xf32>
    %cst_24 = arith.constant 0.000000e+00 : f32
    %59 = vector.broadcast %cst_24 : f32 to vector<1x96xf32>
    %60 = vector.extract_strided_slice %55 {offsets = [1, 0], sizes = [15, 96], strides = [1, 1]} : vector<16x96xf32> to vector<15x96xf32>
    %61 = tpu.concatenate %60, %59 in 0 : vector<15x96xf32>, vector<1x96xf32> -> vector<16x96xf32>
    %62 = arith.subf %58, %28 : vector<16x96xf32>
    %63 = arith.subf %55, %28 : vector<16x96xf32>
    %64 = arith.subf %55, %61 : vector<16x96xf32>
    %65 = arith.subf %58, %61 : vector<16x96xf32>
    %cst_25 = arith.constant 0.000000e+00 : f32
    %66 = vector.broadcast %cst_25 : f32 to vector<16x1xf32>
    %67 = vector.extract_strided_slice %30 {offsets = [0, 1], sizes = [16, 95], strides = [1, 1]} : vector<16x96xf32> to vector<16x95xf32>
    %68 = tpu.concatenate %67, %66 in 1 : vector<16x95xf32>, vector<16x1xf32> -> vector<16x96xf32>
    %cst_26 = arith.constant 0.000000e+00 : f32
    %69 = vector.broadcast %cst_26 : f32 to vector<1x96xf32>
    %70 = vector.extract_strided_slice %30 {offsets = [1, 0], sizes = [15, 96], strides = [1, 1]} : vector<16x96xf32> to vector<15x96xf32>
    %71 = tpu.concatenate %70, %69 in 0 : vector<15x96xf32>, vector<1x96xf32> -> vector<16x96xf32>
    %cst_27 = arith.constant 0.000000e+00 : f32
    %72 = vector.broadcast %cst_27 : f32 to vector<1x96xf32>
    %73 = vector.extract_strided_slice %68 {offsets = [1, 0], sizes = [15, 96], strides = [1, 1]} : vector<16x96xf32> to vector<15x96xf32>
    %74 = tpu.concatenate %73, %72 in 0 : vector<15x96xf32>, vector<1x96xf32> -> vector<16x96xf32>
    %75 = arith.subf %71, %30 : vector<16x96xf32>
    %76 = arith.subf %68, %30 : vector<16x96xf32>
    %77 = arith.subf %68, %74 : vector<16x96xf32>
    %78 = arith.subf %71, %74 : vector<16x96xf32>
    %79 = arith.mulf %62, %76 : vector<16x96xf32>
    %80 = arith.mulf %75, %63 : vector<16x96xf32>
    %81 = arith.subf %79, %80 : vector<16x96xf32>
    %82 = arith.mulf %75, %50 : vector<16x96xf32>
    %83 = arith.mulf %49, %76 : vector<16x96xf32>
    %84 = arith.subf %82, %83 : vector<16x96xf32>
    %85 = arith.mulf %49, %63 : vector<16x96xf32>
    %86 = arith.mulf %62, %50 : vector<16x96xf32>
    %87 = arith.subf %85, %86 : vector<16x96xf32>
    %88 = arith.mulf %64, %78 : vector<16x96xf32>
    %89 = arith.mulf %77, %65 : vector<16x96xf32>
    %90 = arith.subf %88, %89 : vector<16x96xf32>
    %91 = arith.mulf %77, %52 : vector<16x96xf32>
    %92 = arith.mulf %51, %78 : vector<16x96xf32>
    %93 = arith.subf %91, %92 : vector<16x96xf32>
    %94 = arith.mulf %51, %65 : vector<16x96xf32>
    %95 = arith.mulf %64, %52 : vector<16x96xf32>
    %96 = arith.subf %94, %95 : vector<16x96xf32>
    %c0_28 = arith.constant 0 : index
    %c0_29 = arith.constant 0 : index
    %97 = vector.load %arg4[%c0_28, %c0_29] : memref<16x96xf32, #tpu.memory_space<vmem>>, vector<16x96xf32>
    %98 = arith.mulf %81, %81 : vector<16x96xf32>
    %99 = arith.mulf %84, %84 : vector<16x96xf32>
    %100 = arith.addf %98, %99 : vector<16x96xf32>
    %101 = arith.mulf %87, %87 : vector<16x96xf32>
    %102 = arith.addf %100, %101 : vector<16x96xf32>
    %cst_30 = arith.constant 9.99999996E-13 : f32
    %103 = vector.broadcast %cst_30 : f32 to vector<16x96xf32>
    %104 = arith.addf %102, %103 : vector<16x96xf32>
    %105 = math.rsqrt %104 : vector<16x96xf32>
    %106 = arith.mulf %105, %97 : vector<16x96xf32>
    %107 = arith.mulf %90, %90 : vector<16x96xf32>
    %108 = arith.mulf %93, %93 : vector<16x96xf32>
    %109 = arith.addf %107, %108 : vector<16x96xf32>
    %110 = arith.mulf %96, %96 : vector<16x96xf32>
    %111 = arith.addf %109, %110 : vector<16x96xf32>
    %cst_31 = arith.constant 9.99999996E-13 : f32
    %112 = vector.broadcast %cst_31 : f32 to vector<16x96xf32>
    %113 = arith.addf %111, %112 : vector<16x96xf32>
    %114 = math.rsqrt %113 : vector<16x96xf32>
    %115 = arith.mulf %114, %97 : vector<16x96xf32>
    %116 = arith.mulf %81, %106 : vector<16x96xf32>
    %117 = arith.mulf %84, %106 : vector<16x96xf32>
    %118 = arith.mulf %87, %106 : vector<16x96xf32>
    %119 = arith.mulf %90, %115 : vector<16x96xf32>
    %120 = arith.mulf %93, %115 : vector<16x96xf32>
    %121 = arith.mulf %96, %115 : vector<16x96xf32>
    %122 = arith.addf %116, %119 : vector<16x96xf32>
    %cst_32 = arith.constant 0.000000e+00 : f32
    %123 = vector.broadcast %cst_32 : f32 to vector<16x1xf32>
    %124 = vector.extract_strided_slice %122 {offsets = [0, 0], sizes = [16, 95], strides = [1, 1]} : vector<16x96xf32> to vector<16x95xf32>
    %125 = tpu.concatenate %123, %124 in 1 : vector<16x1xf32>, vector<16x95xf32> -> vector<16x96xf32>
    %126 = arith.addf %116, %125 : vector<16x96xf32>
    %cst_33 = arith.constant 0.000000e+00 : f32
    %127 = vector.broadcast %cst_33 : f32 to vector<16x1xf32>
    %128 = vector.extract_strided_slice %119 {offsets = [0, 0], sizes = [16, 95], strides = [1, 1]} : vector<16x96xf32> to vector<16x95xf32>
    %129 = tpu.concatenate %127, %128 in 1 : vector<16x1xf32>, vector<16x95xf32> -> vector<16x96xf32>
    %130 = arith.addf %122, %129 : vector<16x96xf32>
    %cst_34 = arith.constant 0.000000e+00 : f32
    %131 = vector.broadcast %cst_34 : f32 to vector<1x96xf32>
    %132 = vector.extract_strided_slice %130 {offsets = [0, 0], sizes = [15, 96], strides = [1, 1]} : vector<16x96xf32> to vector<15x96xf32>
    %133 = tpu.concatenate %131, %132 in 0 : vector<1x96xf32>, vector<15x96xf32> -> vector<16x96xf32>
    %134 = arith.addf %126, %133 : vector<16x96xf32>
    %135 = arith.addf %117, %120 : vector<16x96xf32>
    %cst_35 = arith.constant 0.000000e+00 : f32
    %136 = vector.broadcast %cst_35 : f32 to vector<16x1xf32>
    %137 = vector.extract_strided_slice %135 {offsets = [0, 0], sizes = [16, 95], strides = [1, 1]} : vector<16x96xf32> to vector<16x95xf32>
    %138 = tpu.concatenate %136, %137 in 1 : vector<16x1xf32>, vector<16x95xf32> -> vector<16x96xf32>
    %139 = arith.addf %117, %138 : vector<16x96xf32>
    %cst_36 = arith.constant 0.000000e+00 : f32
    %140 = vector.broadcast %cst_36 : f32 to vector<16x1xf32>
    %141 = vector.extract_strided_slice %120 {offsets = [0, 0], sizes = [16, 95], strides = [1, 1]} : vector<16x96xf32> to vector<16x95xf32>
    %142 = tpu.concatenate %140, %141 in 1 : vector<16x1xf32>, vector<16x95xf32> -> vector<16x96xf32>
    %143 = arith.addf %135, %142 : vector<16x96xf32>
    %cst_37 = arith.constant 0.000000e+00 : f32
    %144 = vector.broadcast %cst_37 : f32 to vector<1x96xf32>
    %145 = vector.extract_strided_slice %143 {offsets = [0, 0], sizes = [15, 96], strides = [1, 1]} : vector<16x96xf32> to vector<15x96xf32>
    %146 = tpu.concatenate %144, %145 in 0 : vector<1x96xf32>, vector<15x96xf32> -> vector<16x96xf32>
    %147 = arith.addf %139, %146 : vector<16x96xf32>
    %148 = arith.addf %118, %121 : vector<16x96xf32>
    %cst_38 = arith.constant 0.000000e+00 : f32
    %149 = vector.broadcast %cst_38 : f32 to vector<16x1xf32>
    %150 = vector.extract_strided_slice %148 {offsets = [0, 0], sizes = [16, 95], strides = [1, 1]} : vector<16x96xf32> to vector<16x95xf32>
    %151 = tpu.concatenate %149, %150 in 1 : vector<16x1xf32>, vector<16x95xf32> -> vector<16x96xf32>
    %152 = arith.addf %118, %151 : vector<16x96xf32>
    %cst_39 = arith.constant 0.000000e+00 : f32
    %153 = vector.broadcast %cst_39 : f32 to vector<16x1xf32>
    %154 = vector.extract_strided_slice %121 {offsets = [0, 0], sizes = [16, 95], strides = [1, 1]} : vector<16x96xf32> to vector<16x95xf32>
    %155 = tpu.concatenate %153, %154 in 1 : vector<16x1xf32>, vector<16x95xf32> -> vector<16x96xf32>
    %156 = arith.addf %148, %155 : vector<16x96xf32>
    %cst_40 = arith.constant 0.000000e+00 : f32
    %157 = vector.broadcast %cst_40 : f32 to vector<1x96xf32>
    %158 = vector.extract_strided_slice %156 {offsets = [0, 0], sizes = [15, 96], strides = [1, 1]} : vector<16x96xf32> to vector<15x96xf32>
    %159 = tpu.concatenate %157, %158 in 0 : vector<1x96xf32>, vector<15x96xf32> -> vector<16x96xf32>
    %160 = arith.addf %152, %159 : vector<16x96xf32>
    %161 = arith.mulf %134, %134 : vector<16x96xf32>
    %162 = arith.mulf %147, %147 : vector<16x96xf32>
    %163 = arith.addf %161, %162 : vector<16x96xf32>
    %164 = arith.mulf %160, %160 : vector<16x96xf32>
    %165 = arith.addf %163, %164 : vector<16x96xf32>
    %cst_41 = arith.constant 9.99999996E-13 : f32
    %166 = vector.broadcast %cst_41 : f32 to vector<16x96xf32>
    %167 = arith.addf %165, %166 : vector<16x96xf32>
    %168 = math.rsqrt %167 : vector<16x96xf32>
    %c0_42 = arith.constant 0 : index
    %c0_43 = arith.constant 0 : index
    %169 = vector.load %arg5[%c0_42, %c0_43] : memref<1x96xf32, #tpu.memory_space<vmem>>, vector<1x96xf32>
    %170 = vector.broadcast %169 : vector<1x96xf32> to vector<16x96xf32>
    %171 = arith.mulf %168, %170 : vector<16x96xf32>
    %172 = arith.mulf %134, %171 : vector<16x96xf32>
    %c0_44 = arith.constant 0 : index
    %c0_45 = arith.constant 0 : index
    %c0_46 = arith.constant 0 : index
    %173 = vector.load %arg7[%c0_44, %c0_45, %c0_46] : memref<3x16x96xf32, #tpu.memory_space<vmem>>, vector<1x16x96xf32>
    %174 = vector.shape_cast %173 : vector<1x16x96xf32> to vector<16x96xf32>
    %175 = vector.shape_cast %172 : vector<16x96xf32> to vector<1x16x96xf32>
    tpu.vector_store %arg7[%c0_44, %c0_45, %c0_46], %175 {strides = array<i32>} : memref<3x16x96xf32, #tpu.memory_space<vmem>>, vector<1x16x96xf32>,
    %176 = arith.mulf %147, %171 : vector<16x96xf32>
    %c1_47 = arith.constant 1 : index
    %c0_48 = arith.constant 0 : index
    %c0_49 = arith.constant 0 : index
    %177 = vector.load %arg7[%c1_47, %c0_48, %c0_49] : memref<3x16x96xf32, #tpu.memory_space<vmem>>, vector<1x16x96xf32>
    %178 = vector.shape_cast %177 : vector<1x16x96xf32> to vector<16x96xf32>
    %179 = vector.shape_cast %176 : vector<16x96xf32> to vector<1x16x96xf32>
    tpu.vector_store %arg7[%c1_47, %c0_48, %c0_49], %179 {strides = array<i32>} : memref<3x16x96xf32, #tpu.memory_space<vmem>>, vector<1x16x96xf32>,
    %180 = arith.mulf %160, %171 : vector<16x96xf32>
    %c2_50 = arith.constant 2 : index
    %c0_51 = arith.constant 0 : index
    %c0_52 = arith.constant 0 : index
    %181 = vector.load %arg7[%c2_50, %c0_51, %c0_52] : memref<3x16x96xf32, #tpu.memory_space<vmem>>, vector<1x16x96xf32>
    %182 = vector.shape_cast %181 : vector<1x16x96xf32> to vector<16x96xf32>
    %183 = vector.shape_cast %180 : vector<16x96xf32> to vector<1x16x96xf32>
    tpu.vector_store %arg7[%c2_50, %c0_51, %c0_52], %183 {strides = array<i32>} : memref<3x16x96xf32, #tpu.memory_space<vmem>>, vector<1x16x96xf32>,
    return
  }
}

</mosaic_0001>

<bundles_post_ra>
// kernel: forward.1
= control target key start
LH: loop header
LB: loop body
LE: loop exit
PB: predicated region body
PF: predicated region fallthrough
CT: control target
= control target key end

     0   :  { %vm37_vm0 = vcmask 392192   ;;  %vm372_vm5 = vcmask 785408   ;;  %s880_s30 = smov 127   ;;  %vm389_vm6 = vcmask 777216   ;;  %vm392_vm7 = vcmask 1046528   ;;  %s881_s17 = smov 1   ;;  %s1169_s1 = inlined_call_operand.vmem [shape: f32[48,96], index: 1, kind: input, shape index: {}]   ;;  %s1170_s0 = inlined_call_operand.vmem [shape: f32[48,48], index: 0, kind: input, shape index: {}]   ;;  %s1171_s2 = inlined_call_operand.vmem [shape: f32[96,48], index: 2, kind: input, shape index: {}]   ;;  %s1172_s3 = inlined_call_operand.vmem [shape: f32[16,96], index: 3, kind: input, shape index: {}]   ;;  %s1173_s6 = inlined_call_operand.vmem [shape: f32[3,16,96], index: 6, kind: output, shape index: {0}]   ;;  %s1174_s4 = inlined_call_operand.vmem [shape: f32[16,96], index: 4, kind: input, shape index: {}]   ;;  %s1175_s5 = inlined_call_operand.vmem [shape: f32[1,96], index: 5, kind: input, shape index: {}]   ;;  %s1176_s7 = inlined_call_operand.vmem [shape: f32[3,16,96], index: 7, kind: output, shape index: {1}]  }
   0x1   :  { %v31_v0 = vld [vmem:[%s1169_s1] sm:$0xff]  ;;  %v32_v1 = vld [vmem:[%s1169_s1 + $0x8] sm:$0xff]  ;;  %v33_v2 = vld [vmem:[%s1169_s1 + $0x10] sm:$0xff]  ;;  %vm571_vm8 = vcmask 7168   ;;  %vm590_vm9 = vcmask 1040384  }
   0x2   :  { %v824_v3 = vpack.c.bf16 %v32_v1, %v31_v0  ;;  %v34_v4 = vld [vmem:[%s1169_s1 + $0x18] sm:$0xff]  ;;  %v35_v6 = vld [vmem:[%s1169_s1 + $0x20] sm:$0xff]  ;;  %v36_v7 = vld [vmem:[%s1169_s1 + $0x28] sm:$0xff] }
   0x3   :  { %v828_v5 = vpack.c.bf16 %v34_v4, %v33_v2  ;;  %v25_v8 = vld [vmem:[%s1170_s0] sm:$0xff]  ;;  %v832_v9 = vpack.c.bf16 %v36_v7, %v35_v6  ;;  %v26_v10 = vld [vmem:[%s1170_s0 + $0x8] sm:$0xff]  ;;  %v27_v11 = vld [vmem:[%s1170_s0 + $0x10] sm:$0xff] }
   0x4   :  { %825 = vmatprep.subr.bf16.mxu0 %v824_v3  ;;  %785 = vmatprep.mubr.msk.f32.mxu0 %vm37_vm0, %v25_v8  ;;  %v28_v12 = vld [vmem:[%s1170_s0 + $0x18] sm:$0xff]  ;;  %v29_v13 = vld [vmem:[%s1170_s0 + $0x20] sm:$0xff]  ;;  %v30_v14 = vld [vmem:[%s1170_s0 + $0x28] sm:$0xff] }
   0x5   :  { %827 = vmatpush3.bf16.msra.mxu0 %v824_v3  ;;  %v153_v15 = vld [vmem:[%s1171_s2 + $0x10] sm:$0xff]  ;;  %v151_v16 = vld [vmem:[%s1171_s2] sm:$0xff]  ;;  %v154_v26 = vld [vmem:[%s1171_s2 + $0x18] sm:$0xff] }
   0x6   :  { %829 = vmatprep.subr.bf16.mxu0 %v828_v5  ;;  %809 = vmatprep.mubr.msk.f32.mxu1 %vm37_vm0, %v153_v15  ;;  %v152_v27 = vld [vmem:[%s1171_s2 + $0x8] sm:$0xff]  ;;  %v155_v28 = vld [vmem:[%s1171_s2 + $0x20] sm:$0xff]  ;;  %v157_v30 = vld [vmem:[%s1171_s2 + $0x30] sm:$0xff] }
   0x7   :  { %v156_v29 = vld [vmem:[%s1171_s2 + $0x28] sm:$0xff]  ;;  %v158_v31 = vld [vmem:[%s1171_s2 + $0x38] sm:$0xff]  ;;  %v159_v32 = vld [vmem:[%s1171_s2 + $0x40] sm:$0xff] }
   0x8   :  { %v160_v33 = vld [vmem:[%s1171_s2 + $0x48] sm:$0xff]  ;;  %v161_v34 = vld [vmem:[%s1171_s2 + $0x50] sm:$0xff]  ;;  %v162_v35 = vld [vmem:[%s1171_s2 + $0x58] sm:$0xff] }
   0x9   :  { %831 = vmatpush3.bf16.msra.mxu0 %v828_v5  ;;  %v349_v36 = vld [vmem:[%s1172_s3 + $0x8] sm:$0xff]  ;;  %v348_v37 = vld [vmem:[%s1172_s3] sm:$0xff] }
   0xa   :  { %833 = vmatprep.subr.bf16.mxu0 %v832_v9  ;;  %v351_v38 = vsub.f32 0.0, %v349_v36  ;;  %v350_v39 = vsub.f32 0.0, %v348_v37 }
   0xc   :  { %v354_v40 = vmul.f32 1.442695, %v351_v38  ;;  %v352_v41 = vmul.f32 1.442695, %v350_v39 }
   0xd   :  { %835 = vmatpush3.bf16.msra.mxu0 %v832_v9 }
   0xe   :  { %856 = vpow2.f32 %v354_v40 }
   0xf   :  { %858 = vpow2.f32 %v352_v41 }
  0x10   :  { %786 = vmatmul.mubr.msk.f32.vlgmr.msra.gmra.mrb[0].mxu0 %vm37_vm0, %v26_v10 }
  0x11   :  { %788 = vmatprep.mubr.msk.f32.mxu0 %vm37_vm0, %v27_v11 }
  0x14   :  { %789 = vmatmul.mubr.msk.f32.gmra.mrb[2].mxu0 %vm37_vm0, %v28_v12 }
  0x15   :  { %791 = vmatprep.mubr.msk.f32.mxu0 %vm37_vm0, %v29_v13 }
  0x18   :  { %792 = vmatmul.mubr.msk.f32.gmra.mrb[4].mxu0 %vm37_vm0, %v30_v14  ;;  %v857_v50 = vpop.eup %856 }
  0x19   :  { %806 = vmatprep.mubr.msk.f32.mxu0 %vm37_vm0, %v151_v16  ;;  %v859_v52 = vpop.eup %858  ;;  %v357_v59 = vadd.f32 1.0, %v857_v50 }
  0x1a   :  { %v356_v62 = vadd.f32 1.0, %v859_v52 }
  0x1b   :  { %860 = vrcp.f32 %v357_v59 }
  0x1c   :  { %862 = vrcp.f32 %v356_v62 }
  0x25   :  { %v861_v4 = vpop.eup %860 }
  0x26   :  { %v863_v5 = vpop.eup %862  ;;  %v363_v9 = vmul.f32 0.5, %v861_v4 }
  0x27   :  { %v362_v12 = vmul.f32 0.5, %v863_v5 }
  0xe3   :  { %v787_v17 = vpop.f32.mrb[0].mxu0 }
  0xe4   :  { %v122_v18 = vpop.f32.mrb[1].mxu0 }
  0xe5   :  { %v836_v19 = vpack.c.bf16 %v787_v17, %v122_v18 }
  0xe7   :  { %v790_v20 = vpop.f32.mrb[2].mxu0  ;;  %837 = vmatprep.subr.bf16.mxu0 %v836_v19  ;;  %848 = vmatprep.subr.bf16.mxu1 %v836_v19 }
  0xe8   :  { %v132_v21 = vpop.f32.mrb[3].mxu0  ;;  %839 = vmatpush3.bf16.msra.mxu0 %v836_v19  ;;  %851 = vmatpush3.bf16.msra.mxu1 %v836_v19 }
  0xe9   :  { %v840_v22 = vpack.c.bf16 %v790_v20, %v132_v21 }
  0xeb   :  { %v793_v23 = vpop.f32.mrb[4].mxu0  ;;  %841 = vmatprep.subr.bf16.mxu0 %v840_v22  ;;  %849 = vmatprep.subr.bf16.mxu1 %v840_v22 }
  0xec   :  { %v142_v24 = vpop.f32.mrb[5].mxu0  ;;  %843 = vmatpush3.bf16.msra.mxu0 %v840_v22  ;;  %852 = vmatpush3.bf16.msra.mxu1 %v840_v22 }
  0xed   :  { %v844_v25 = vpack.c.bf16 %v793_v23, %v142_v24 }
  0xef   :  { %845 = vmatprep.subr.bf16.mxu0 %v844_v25  ;;  %850 = vmatprep.subr.bf16.mxu1 %v844_v25 }
  0xf0   :  { %847 = vmatpush3.bf16.msra.mxu0 %v844_v25  ;;  %853 = vmatpush3.bf16.msra.mxu1 %v844_v25 }
  0xf3   :  { %810 = vmatmul.mubr.msk.f32.vlgmr.msra.gmra.mrb[0].mxu1 %vm37_vm0, %v154_v26  ;;  %807 = vmatmul.mubr.msk.f32.vlgmr.msra.gmra.mrb[6].mxu0 %vm37_vm0, %v152_v27 }
  0xf4   :  { %812 = vmatprep.mubr.msk.f32.mxu1 %vm37_vm0, %v155_v28 }
  0xf7   :  { %813 = vmatmul.mubr.msk.f32.gmra.mrb[2].mxu1 %vm37_vm0, %v156_v29 }
  0xf8   :  { %815 = vmatprep.mubr.msk.f32.mxu1 %vm37_vm0, %v157_v30 }
  0xfb   :  { %816 = vmatmul.mubr.msk.f32.gmra.mrb[4].mxu1 %vm37_vm0, %v158_v31 }
  0xfc   :  { %818 = vmatprep.mubr.msk.f32.mxu1 %vm37_vm0, %v159_v32 }
  0xff   :  { %819 = vmatmul.mubr.msk.f32.gmra.mrb[6].mxu1 %vm37_vm0, %v160_v33 }
 0x100   :  { %821 = vmatprep.mubr.msk.f32.mxu1 %vm37_vm0, %v161_v34 }
 0x103   :  { %822 = vmatmul.mubr.msk.f32.gmra.mrb[8].mxu1 %vm37_vm0, %v162_v35 }
 0x1c6   :  { %v811_v42 = vpop.f32.mrb[0].mxu1  ;;  %v808_v43 = vpop.f32.mrb[6].mxu0 }
 0x1c7   :  { %v275_v44 = vpop.f32.mrb[1].mxu1  ;;  %v265_v45 = vpop.f32.mrb[7].mxu0 }
 0x1ca   :  { %v814_v46 = vpop.f32.mrb[2].mxu1 }
 0x1cb   :  { %v285_v47 = vpop.f32.mrb[3].mxu1 }
 0x1ce   :  { %v817_v48 = vpop.f32.mrb[4].mxu1 }
 0x1cf   :  { %v295_v49 = vpop.f32.mrb[5].mxu1  ;;  %v325_v53 = vmul.f32 %v817_v48, %v817_v48 }
 0x1d0   :  { %v324_v56 = vmul.f32 %v295_v49, %v295_v49 }
 0x1d2   :  { %v820_v51 = vpop.f32.mrb[6].mxu1 }
 0x1d3   :  { %v327_v54 = vmul.f32 %v820_v51, %v820_v51  ;;  %v305_v55 = vpop.f32.mrb[7].mxu1 }
 0x1d4   :  { %v326_v57 = vmul.f32 %v305_v55, %v305_v55 }
 0x1d5   :  { %v329_v58 = vadd.f32 %v327_v54, %v325_v53 }
 0x1d6   :  { %v328_v60 = vadd.f32 %v326_v57, %v324_v56  ;;  %v823_v61 = vpop.f32.mrb[8].mxu1 }
 0x1d7   :  { %v331_v63 = vmul.f32 %v823_v61, %v823_v61  ;;  %v315_v0 = vpop.f32.mrb[9].mxu1 }
 0x1d8   :  { %v330_v1 = vmul.f32 %v315_v0, %v315_v0 }
 0x1d9   :  { %v333_v2 = vadd.f32 %v331_v63, %v329_v58 }
 0x1da   :  { %v332_v3 = vadd.f32 %v330_v1, %v328_v60 }
 0x1db   :  { %864 = vrsqrt.f32 %v333_v2  ;;  %vm343_vm1 = vcmp.eq.f32.partialorder %v333_v2, inf  ;;  %v346_v10 = vand.u32 2147483648, %v333_v2  ;;  %vm345_vm2 = vcmp.eq.f32.partialorder %v333_v2, 0.0 }
 0x1dc   :  { %866 = vrsqrt.f32 %v332_v3  ;;  %vm336_vm3 = vcmp.eq.f32.partialorder %v332_v3, inf  ;;  %v339_v14 = vand.u32 2147483648, %v332_v3  ;;  %vm338_vm4 = vcmp.eq.f32.partialorder %v332_v3, 0.0 }
 0x1e5   :  { %v865_v6 = vpop.eup %864 }
 0x1e6   :  { %v867_v7 = vpop.eup %866  ;;  %v342_v8 = vmul.f32 %v865_v6, %v333_v2 }
 0x1e7   :  { %v335_v11 = vmul.f32 %v867_v7, %v332_v3 }
 0x1e8   :  { %v344_v13 = vsel %vm343_vm1, %v333_v2, %v342_v8 }
 0x1e9   :  { %v347_v15 = vsel %vm345_vm2, %v346_v10, %v344_v13  ;;  %v337_v16 = vsel %vm336_vm3, %v332_v3, %v335_v11 }
 0x1ea   :  { %v365_v17 = vmul.f32 %v363_v9, %v347_v15  ;;  %v340_v18 = vsel %vm338_vm4, %v339_v14, %v337_v16 }
 0x1eb   :  { %v364_v19 = vmul.f32 %v362_v12, %v340_v18 }
 0x1ec   :  { %v367_v20 = vadd.f32 %v808_v43, %v365_v17  ;;  %v369_v21 = vadd.f32 %v811_v42, %v365_v17  ;;  %v1018_v22 = vadd.f32 %v814_v46, %v365_v17 }
 0x1ed   :  { %v1020_v23 = vadd.f32 %v364_v19, %v265_v45  ;;  %v368_v24 = vadd.f32 %v364_v19, %v275_v44  ;;  %v1022_v25 = vadd.f32 %v364_v19, %v285_v47 }
 0x1ee   :  { %374 = vst.msk [vmem:[%s1173_s6 + $0x8] sm:$0xff] %vm372_vm5, %v367_v20  ;;  %735 = vst.msk [vmem:[%s1173_s6 + $0x18] sm:$0xff] %vm372_vm5, %v369_v21  ;;  %419 = vrot.lane.b32.xlu1 %v369_v21, %s880_s30  ;;  %385 = vrot.lane.b32.xlu0 %v367_v20, %s880_s30  ;;  %v458_v26 = vrot.slane %v1018_v22, 1  ;;  %v394_v27 = vrot.slane %v367_v20, 1  ;;  %v426_v29 = vrot.slane %v369_v21, 1 }
 0x1ef   :  { %737 = vst.msk [vmem:[%s1173_s6 + $0x28] sm:$0xff] %vm372_vm5, %v1018_v22  ;;  %373 = vst.msk [vmem:[%s1173_s6] sm:$0xff] %vm372_vm5, %v1020_v23  ;;  %v457_v31 = vrot.slane %v1022_v25, 1  ;;  %v393_v34 = vrot.slane %v1020_v23, 1  ;;  %v425_v35 = vrot.slane %v368_v24, 1 }
 0x1f0   :  { %734 = vst.msk [vmem:[%s1173_s6 + $0x10] sm:$0xff] %vm372_vm5, %v368_v24  ;;  %736 = vst.msk [vmem:[%s1173_s6 + $0x20] sm:$0xff] %vm372_vm5, %v1022_v25  ;;  %v462_v38 = vsel %vm392_vm7, %v458_v26, 0.0  ;;  %v398_v39 = vsel %vm392_vm7, %v394_v27, 0.0  ;;  %v430_v40 = vsel %vm392_vm7, %v426_v29, 0.0 }
 0x1f1   :  { %v459_v43 = vsel %vm392_vm7, %v457_v31, %v458_v26  ;;  %v395_v48 = vsel %vm392_vm7, %v393_v34, %v394_v27  ;;  %v427_v49 = vsel %vm392_vm7, %v425_v35, %v426_v29  ;;  %v472_v57 = vsub.f32 %v462_v38, %v1018_v22 }
 0x1f2   :  { %417 = vrot.lane.b32.xlu1 %v368_v24, %s880_s30  ;;  %383 = vrot.lane.b32.xlu0 %v1020_v23, %s880_s30  ;;  %v408_v58 = vsub.f32 %v398_v39, %v367_v20  ;;  %v440_v59 = vsub.f32 %v430_v40, %v369_v21  ;;  %v471_v61 = vsub.f32 %v459_v43, %v1022_v25 }
 0x1f3   :  { %v407_v62 = vsub.f32 %v395_v48, %v1020_v23  ;;  %v439_v0 = vsub.f32 %v427_v49, %v368_v24 }
 0x1f6   :  { %451 = vrot.lane.b32.xlu1 %v1018_v22, %s880_s30  ;;  %449 = vrot.lane.b32.xlu0 %v1022_v25, %s880_s30 }
 0x260   :  { %v420_v28 = vpop.permute.xlu1 %419  ;;  %v386_v30 = vpop.permute.xlu0 %385 }
 0x261   :  { %v424_v32 = vsel %vm389_vm6, %v420_v28, 0.0  ;;  %v391_v33 = vsel %vm389_vm6, %v386_v30, 0.0 }
 0x262   :  { %v434_v36 = vrot.slane %v424_v32, 1  ;;  %v402_v37 = vrot.slane %v391_v33, 1  ;;  %v442_v54 = vsub.f32 %v424_v32, %v369_v21  ;;  %v410_v55 = vsub.f32 %v391_v33, %v367_v20 }
 0x264   :  { %v438_v41 = vsel %vm392_vm7, %v434_v36, 0.0  ;;  %v406_v42 = vsel %vm392_vm7, %v402_v37, 0.0  ;;  %v418_v44 = vpop.permute.xlu1 %417  ;;  %v384_v45 = vpop.permute.xlu0 %383  ;;  %v482_v7 = vmul.f32 %v472_v57, %v442_v54  ;;  %v492_v8 = vmul.f32 %v442_v54, %v408_v58 }
 0x265   :  { %v444_v46 = vsub.f32 %v424_v32, %v438_v41  ;;  %v446_v47 = vsub.f32 %v430_v40, %v438_v41  ;;  %v412_v50 = vsub.f32 %v391_v33, %v406_v42  ;;  %v414_v51 = vsub.f32 %v398_v39, %v406_v42 }
 0x266   :  { %v423_v52 = vsel %vm389_vm6, %v418_v44, 0.0  ;;  %v390_v53 = vsel %vm389_vm6, %v384_v45, 0.0  ;;  %v486_v9 = vmul.f32 %v472_v57, %v410_v55  ;;  %v494_v19 = vmul.f32 %v440_v59, %v410_v55 }
 0x267   :  { %v433_v56 = vrot.slane %v423_v52, 1  ;;  %v401_v60 = vrot.slane %v390_v53, 1  ;;  %v510_v3 = vmul.f32 %v446_v47, %v412_v50  ;;  %v512_v4 = vmul.f32 %v444_v46, %v414_v51 }
 0x268   :  { %v452_v1 = vpop.permute.xlu1 %451  ;;  %v450_v2 = vpop.permute.xlu0 %449  ;;  %v441_v5 = vsub.f32 %v423_v52, %v368_v24  ;;  %v409_v10 = vsub.f32 %v390_v53, %v1020_v23 }
 0x269   :  { %v435_v63 = vsel %vm392_vm7, %v433_v56, %v434_v36  ;;  %v403_v6 = vsel %vm392_vm7, %v401_v60, %v402_v37  ;;  %v456_v13 = vsel %vm389_vm6, %v452_v1, 0.0  ;;  %v455_v14 = vsel %vm389_vm6, %v450_v2, 0.0 }
 0x26a   :  { %v443_v11 = vsub.f32 %v423_v52, %v435_v63  ;;  %v445_v12 = vsub.f32 %v427_v49, %v435_v63  ;;  %v411_v15 = vsub.f32 %v390_v53, %v403_v6  ;;  %v413_v16 = vsub.f32 %v395_v48, %v403_v6 }
 0x26b   :  { %v466_v17 = vrot.slane %v456_v13, 1  ;;  %v474_v18 = vsub.f32 %v456_v13, %v1018_v22  ;;  %v1078_v20 = vsub.f32 %v510_v3, %v512_v4  ;;  %v481_v21 = vmul.f32 %v471_v61, %v441_v5 }
 0x26c   :  { %v465_v24 = vrot.slane %v455_v14, 1  ;;  %v473_v28 = vsub.f32 %v455_v14, %v1022_v25  ;;  %v491_v29 = vmul.f32 %v441_v5, %v407_v62  ;;  %v485_v33 = vmul.f32 %v471_v61, %v409_v10 }
 0x26d   :  { %v470_v26 = vsel %vm392_vm7, %v466_v17, 0.0  ;;  %v480_v27 = vmul.f32 %v474_v18, %v440_v59  ;;  %v488_v23 = vmul.f32 %v474_v18, %v408_v58  ;;  %v509_v34 = vmul.f32 %v445_v12, %v411_v15 }
 0x26e   :  { %v476_v30 = vsub.f32 %v456_v13, %v470_v26  ;;  %v478_v31 = vsub.f32 %v462_v38, %v470_v26  ;;  %v467_v32 = vsel %vm392_vm7, %v465_v24, %v466_v17  ;;  %v511_v35 = vmul.f32 %v443_v11, %v413_v16  ;;  %v515_v26 = vld [vmem:[%s1174_s4] sm:$0xff] }
 0x26f   :  { %v475_v22 = vsub.f32 %v455_v14, %v467_v32  ;;  %v1083_v41 = vsub.f32 %v480_v27, %v482_v7  ;;  %v1085_v42 = vsub.f32 %v486_v9, %v488_v23  ;;  %v477_v44 = vsub.f32 %v459_v43, %v467_v32 }
 0x270   :  { %v498_v36 = vmul.f32 %v478_v31, %v444_v46  ;;  %v500_v37 = vmul.f32 %v476_v30, %v446_v47  ;;  %v504_v39 = vmul.f32 %v476_v30, %v414_v51  ;;  %v506_v40 = vmul.f32 %v478_v31, %v412_v50 }
 0x271   :  { %v479_v45 = vmul.f32 %v473_v28, %v439_v0  ;;  %v487_v48 = vmul.f32 %v473_v28, %v407_v62  ;;  %v499_v49 = vmul.f32 %v475_v22, %v445_v12  ;;  %v503_v38 = vmul.f32 %v475_v22, %v413_v16 }
 0x272   :  { %v508_v25 = vsub.f32 %v504_v39, %v506_v40  ;;  %v493_v52 = vmul.f32 %v439_v0, %v409_v10  ;;  %v497_v54 = vmul.f32 %v477_v44, %v443_v11  ;;  %v505_v55 = vmul.f32 %v477_v44, %v411_v15 }
 0x273   :  { %v1087_v53 = vsub.f32 %v479_v45, %v481_v21  ;;  %v513_v56 = vsub.f32 %v509_v34, %v511_v35  ;;  %v1089_v47 = vsub.f32 %v485_v33, %v487_v48  ;;  %v502_v50 = vsub.f32 %v498_v36, %v500_v37 }
 0x274   :  { %v536_v46 = vmul.f32 %v508_v25, %v508_v25  ;;  %v518_v51 = vmul.f32 %v1083_v41, %v1083_v41  ;;  %v520_v43 = vmul.f32 %v1085_v42, %v1085_v42  ;;  %v507_v57 = vsub.f32 %v503_v38, %v505_v55 }
 0x275   :  { %v501_v58 = vsub.f32 %v497_v54, %v499_v49  ;;  %v517_v59 = vmul.f32 %v1087_v53, %v1087_v53  ;;  %v519_v60 = vmul.f32 %v1089_v47, %v1089_v47  ;;  %v534_v61 = vmul.f32 %v502_v50, %v502_v50 }
 0x276   :  { %v496_v62 = vsub.f32 %v492_v8, %v494_v19  ;;  %v535_v63 = vmul.f32 %v507_v57, %v507_v57  ;;  %v540_v1 = vmul.f32 %v1078_v20, %v1078_v20  ;;  %v495_v2 = vsub.f32 %v491_v29, %v493_v52  ;;  %v516_v19 = vld [vmem:[%s1174_s4 + $0x8] sm:$0xff] }
 0x277   :  { %v533_v0 = vmul.f32 %v501_v58, %v501_v58  ;;  %v538_v3 = vadd.f32 %v536_v46, %v534_v61  ;;  %v539_v4 = vmul.f32 %v513_v56, %v513_v56  ;;  %v522_v5 = vadd.f32 %v520_v43, %v518_v51 }
 0x278   :  { %v521_v7 = vadd.f32 %v519_v60, %v517_v59  ;;  %v524_v10 = vmul.f32 %v496_v62, %v496_v62  ;;  %v523_v12 = vmul.f32 %v495_v2, %v495_v2 }
 0x279   :  { %v537_v6 = vadd.f32 %v535_v63, %v533_v0  ;;  %v542_v9 = vadd.f32 %v540_v1, %v538_v3 }
 0x27a   :  { %v526_v14 = vadd.f32 %v524_v10, %v522_v5  ;;  %v525_v16 = vadd.f32 %v523_v12, %v521_v7 }
 0x27b   :  { %v541_v11 = vadd.f32 %v539_v4, %v537_v6  ;;  %v544_v13 = vadd.f32 1e-12, %v542_v9 }
 0x27c   :  { %v528_v8 = vadd.f32 1e-12, %v526_v14  ;;  %v527_v17 = vadd.f32 1e-12, %v525_v16 }
 0x27d   :  { %v543_v15 = vadd.f32 1e-12, %v541_v11  ;;  %868 = vrsqrt.f32 %v544_v13 }
 0x27f   :  { %870 = vrsqrt.f32 %v543_v15 }
 0x280   :  { %872 = vrsqrt.f32 %v528_v8 }
 0x281   :  { %874 = vrsqrt.f32 %v527_v17 }
 0x287   :  { %v869_v18 = vpop.eup %868 }
 0x288   :  { %v548_v24 = vmul.f32 %v869_v18, %v516_v19 }
 0x289   :  { %v871_v21 = vpop.eup %870 }
 0x28a   :  { %v547_v27 = vmul.f32 %v871_v21, %v515_v26  ;;  %v556_v23 = vmul.f32 %v548_v24, %v502_v50  ;;  %v873_v29 = vpop.eup %872  ;;  %v558_v31 = vmul.f32 %v548_v24, %v508_v25  ;;  %v560_v35 = vmul.f32 %v548_v24, %v1078_v20 }
 0x28b   :  { %v875_v30 = vpop.eup %874  ;;  %v532_v33 = vmul.f32 %v873_v29, %v516_v19 }
 0x28c   :  { %v555_v28 = vmul.f32 %v547_v27, %v501_v58  ;;  %580 = vrot.lane.b32.xlu1 %v556_v23, %s881_s17  ;;  %v557_v32 = vmul.f32 %v547_v27, %v507_v57  ;;  %v531_v34 = vmul.f32 %v875_v30, %v515_v26  ;;  %v559_v22 = vmul.f32 %v547_v27, %v513_v56 }
 0x28d   :  { %v550_v36 = vmul.f32 %v532_v33, %v1083_v41  ;;  %v552_v44 = vmul.f32 %v532_v33, %v1085_v42  ;;  %v554_v48 = vmul.f32 %v532_v33, %v496_v62 }
 0x28e   :  { %578 = vrot.lane.b32.xlu0 %v555_v28, %s881_s17  ;;  %v549_v37 = vmul.f32 %v531_v34, %v1087_v53  ;;  %v551_v45 = vmul.f32 %v531_v34, %v1089_v47  ;;  %v553_v41 = vmul.f32 %v531_v34, %v495_v2 }
 0x28f   :  { %v562_v39 = vadd.f32 %v556_v23, %v550_v36  ;;  %v600_v20 = vadd.f32 %v558_v31, %v552_v44  ;;  %v636_v49 = vadd.f32 %v560_v35, %v554_v48 }
 0x290   :  { %617 = vrot.lane.b32.xlu1 %v558_v31, %s881_s17  ;;  %v561_v40 = vadd.f32 %v555_v28, %v549_v37  ;;  %v599_v25 = vadd.f32 %v557_v32, %v551_v45  ;;  %v635_v38 = vadd.f32 %v559_v22, %v553_v41 }
 0x292   :  { %615 = vrot.lane.b32.xlu0 %v557_v32, %s881_s17 }
 0x294   :  { %653 = vrot.lane.b32.xlu1 %v560_v35, %s881_s17 }
 0x296   :  { %651 = vrot.lane.b32.xlu0 %v559_v22, %s881_s17 }
 0x298   :  { %567 = vrot.lane.b32.xlu1 %v562_v39, %s881_s17 }
 0x29a   :  { %565 = vrot.lane.b32.xlu0 %v561_v40, %s881_s17 }
 0x29c   :  { %605 = vrot.lane.b32.xlu1 %v600_v20, %s881_s17 }
 0x29e   :  { %603 = vrot.lane.b32.xlu0 %v599_v25, %s881_s17 }
 0x2a0   :  { %641 = vrot.lane.b32.xlu1 %v636_v49, %s881_s17 }
 0x2a2   :  { %639 = vrot.lane.b32.xlu0 %v635_v38, %s881_s17 }
 0x2fe   :  { %v581_v52 = vpop.permute.xlu1 %580 }
 0x2ff   :  { %v585_v55 = vsel %vm571_vm8, 0.0, %v581_v52 }
 0x300   :  { %v579_v42 = vpop.permute.xlu0 %578  ;;  %v587_v43 = vadd.f32 %v585_v55, %v562_v39 }
 0x301   :  { %v584_v56 = vsel %vm571_vm8, 0.0, %v579_v42 }
 0x302   :  { %v618_v53 = vpop.permute.xlu1 %617  ;;  %v586_v57 = vadd.f32 %v584_v56, %v561_v40  ;;  %v592_v1 = vrot.slane %v587_v43, 7 }
 0x303   :  { %v622_v46 = vsel %vm571_vm8, 0.0, %v618_v53 }
 0x304   :  { %v616_v54 = vpop.permute.xlu0 %615  ;;  %v624_v58 = vadd.f32 %v622_v46, %v600_v20  ;;  %v591_v2 = vrot.slane %v586_v57, 7 }
 0x305   :  { %v621_v47 = vsel %vm571_vm8, 0.0, %v616_v54 }
 0x306   :  { %v654_v50 = vpop.permute.xlu1 %653  ;;  %v623_v59 = vadd.f32 %v621_v47, %v599_v25  ;;  %v628_v4 = vrot.slane %v624_v58, 7  ;;  %v593_v14 = vsel %vm590_vm9, %v591_v2, %v592_v1  ;;  %v596_v21 = vsel %vm590_vm9, 0.0, %v591_v2 }
 0x307   :  { %v658_v60 = vsel %vm571_vm8, 0.0, %v654_v50 }
 0x308   :  { %v652_v51 = vpop.permute.xlu0 %651  ;;  %v627_v5 = vrot.slane %v623_v59, 7  ;;  %v660_v6 = vadd.f32 %v658_v60, %v636_v49 }
 0x309   :  { %v657_v61 = vsel %vm571_vm8, 0.0, %v652_v51 }
 0x30a   :  { %v568_v62 = vpop.permute.xlu1 %567  ;;  %v659_v7 = vadd.f32 %v657_v61, %v635_v38  ;;  %v664_v8 = vrot.slane %v660_v6, 7  ;;  %v629_v18 = vsel %vm590_vm9, %v627_v5, %v628_v4  ;;  %v632_v24 = vsel %vm590_vm9, 0.0, %v627_v5 }
 0x30b   :  { %v573_v63 = vsel %vm571_vm8, 0.0, %v568_v62 }
 0x30c   :  { %v566_v0 = vpop.permute.xlu0 %565  ;;  %v575_v9 = vadd.f32 %v573_v63, %v550_v36  ;;  %v663_v17 = vrot.slane %v659_v7, 7 }
 0x30d   :  { %v572_v3 = vsel %vm571_vm8, 0.0, %v566_v0 }
 0x30e   :  { %v606_v10 = vpop.permute.xlu1 %605  ;;  %v574_v11 = vadd.f32 %v572_v3, %v549_v37  ;;  %v598_v26 = vadd.f32 %v593_v14, %v575_v9  ;;  %v665_v22 = vsel %vm590_vm9, %v663_v17, %v664_v8  ;;  %v668_v37 = vsel %vm590_vm9, 0.0, %v663_v17 }
 0x30f   :  { %v610_v12 = vsel %vm571_vm8, 0.0, %v606_v10 }
 0x310   :  { %v604_v13 = vpop.permute.xlu0 %603  ;;  %v612_v15 = vadd.f32 %v610_v12, %v552_v44  ;;  %v597_v28 = vadd.f32 %v596_v21, %v574_v11  ;;  %v672_v39 = vmul.f32 %v598_v26, %v598_v26 }
 0x311   :  { %v609_v16 = vsel %vm571_vm8, 0.0, %v604_v13 }
 0x312   :  { %v611_v19 = vadd.f32 %v609_v16, %v551_v45  ;;  %v634_v27 = vadd.f32 %v629_v18, %v612_v15  ;;  %v642_v23 = vpop.permute.xlu1 %641  ;;  %v671_v44 = vmul.f32 %v597_v28, %v597_v28 }
 0x313   :  { %v646_v30 = vsel %vm571_vm8, 0.0, %v642_v23 }
 0x314   :  { %v633_v29 = vadd.f32 %v632_v24, %v611_v19  ;;  %v640_v31 = vpop.permute.xlu0 %639  ;;  %v674_v32 = vmul.f32 %v634_v27, %v634_v27  ;;  %v648_v33 = vadd.f32 %v646_v30, %v554_v48 }
 0x315   :  { %v645_v34 = vsel %vm571_vm8, 0.0, %v640_v31 }
 0x316   :  { %v673_v35 = vmul.f32 %v633_v29, %v633_v29  ;;  %v647_v36 = vadd.f32 %v645_v34, %v553_v41  ;;  %v670_v40 = vadd.f32 %v665_v22, %v648_v33  ;;  %v676_v20 = vadd.f32 %v674_v32, %v672_v39  ;;  %v738_v41 = vld [vmem:[%s1175_s5] ss:$0 sm:$0xff] }
 0x318   :  { %v669_v45 = vadd.f32 %v668_v37, %v647_v36  ;;  %v678_v25 = vmul.f32 %v670_v40, %v670_v40  ;;  %v675_v49 = vadd.f32 %v673_v35, %v671_v44 }
 0x31a   :  { %v677_v38 = vmul.f32 %v669_v45, %v669_v45  ;;  %v680_v52 = vadd.f32 %v678_v25, %v676_v20 }
 0x31c   :  { %v679_v42 = vadd.f32 %v677_v38, %v675_v49  ;;  %v682_v53 = vadd.f32 1e-12, %v680_v52 }
 0x31e   :  { %v681_v48 = vadd.f32 1e-12, %v679_v42  ;;  %876 = vrsqrt.f32 %v682_v53 }
 0x320   :  { %878 = vrsqrt.f32 %v681_v48 }
 0x328   :  { %v877_v54 = vpop.eup %876 }
 0x329   :  { %v693_v56 = vmul.f32 %v877_v54, %v738_v41 }
 0x32a   :  { %v879_v55 = vpop.eup %878 }
 0x32b   :  { %v692_v46 = vmul.f32 %v879_v55, %v738_v41  ;;  %v695_v47 = vmul.f32 %v693_v56, %v598_v26  ;;  %v699_v50 = vmul.f32 %v693_v56, %v634_v27  ;;  %v704_v51 = vmul.f32 %v693_v56, %v670_v40 }
 0x32d   :  { %v694_v43 = vmul.f32 %v692_v46, %v597_v28  ;;  %v698_v57 = vmul.f32 %v692_v46, %v633_v29  ;;  %v703_v58 = vmul.f32 %v692_v46, %v669_v45  ;;  %697 = vst.msk [vmem:[%s1176_s7 + $0x8] sm:$0xff] %vm372_vm5, %v695_v47  ;;  %740 = vst.msk [vmem:[%s1176_s7 + $0x18] sm:$0xff] %vm372_vm5, %v699_v50 }
 0x32e   :  { %742 = vst.msk [vmem:[%s1176_s7 + $0x28] sm:$0xff] %vm372_vm5, %v704_v51 }
 0x32f   :  { %696 = vst.msk [vmem:[%s1176_s7] sm:$0xff] %vm372_vm5, %v694_v43  ;;  %739 = vst.msk [vmem:[%s1176_s7 + $0x10] sm:$0xff] %vm372_vm5, %v698_v57 }
 0x330   :  { %741 = vst.msk [vmem:[%s1176_s7 + $0x20] sm:$0xff] %vm372_vm5, %v703_v58 }

</bundles_post_ra>
